<compile_context>
chip_gen: v7x
topology: tpu7x:2x2x1
jax: 0.10.0
libtpu: 0.0.40
codegen_flags: <defaults>
</compile_context>

<pallas_src>
import functools

import jax
import jax.numpy as jnp
from jax.experimental import pallas as pl
from jax.experimental.pallas import tpu as pltpu


_ROW_ALIGN = 16          # bf16 packs 2 rows/sublane -> keep tiles 16-row aligned
_MAX_BATCH_TILE = 2048   # ~5 MiB/step double-buffered: fits v5e's 16 MiB scoped VMEM


def _round_up(n, m):
    return ((n + m - 1) // m) * m


def _choose_batch_tile(batch):
    """Single tile when the batch fits (no pointless grid split on 1-TC chips);
    otherwise an even number of ~max-size tiles so a 2-TC chip (v7x) gets a
    balanced 'parallel' axis. Tiles are 16-row aligned for bf16 packing."""
    if batch <= _MAX_BATCH_TILE:
        return _round_up(max(batch, _ROW_ALIGN), _ROW_ALIGN)
    steps = pl.cdiv(batch, _MAX_BATCH_TILE)
    if steps % 2:
        steps += 1
    return _round_up(pl.cdiv(batch, steps), _ROW_ALIGN)


def _actor_kernel(x_ref, w1_ref, b1_ref, w2_ref, b2_ref, w3_ref, b3_ref, o_ref):
    # Whole hot path (3 matmuls + 2 ReLUs + bias adds) in one kernel.
    # bf16 operands on the MXU, f32 accumulation; elementwise work in f32.
    x = x_ref[...].astype(jnp.bfloat16)                     # in-kernel cast (free on VPU)
    h1 = jnp.dot(x, w1_ref[...], preferred_element_type=jnp.float32) + b1_ref[...]
    h1 = jnp.maximum(h1, 0.0).astype(jnp.bfloat16)
    h2 = jnp.dot(h1, w2_ref[...], preferred_element_type=jnp.float32) + b2_ref[...]
    h2 = jnp.maximum(h2, 0.0).astype(jnp.bfloat16)
    out = jnp.dot(h2, w3_ref[...], preferred_element_type=jnp.float32) + b3_ref[...]
    o_ref[...] = out.astype(o_ref.dtype)                    # (bt, act_size): no lane padding


@functools.partial(jax.jit, static_argnames=("batch_tile",))
def actor_forward(x, params, batch_tile=None):
    """x: [B, obs_size] float32. params: dict of w1,b1,w2,b2,w3,b3 (w as [in, out])."""
    B, obs_size = x.shape
    hid = params["w1"].shape[1]
    act_size = params["w3"].shape[1]

    bt = _choose_batch_tile(B) if batch_tile is None else batch_tile
    B_pad = _round_up(B, bt)

    # Only materialize a padded copy of x when the batch is ragged w.r.t. the tile.
    x_p = x if B_pad == B else jnp.pad(x, ((0, B_pad - B), (0, 0)))

    w1 = params["w1"].astype(jnp.bfloat16)
    w2 = params["w2"].astype(jnp.bfloat16)
    w3 = params["w3"].astype(jnp.bfloat16)
    b1 = params["b1"].astype(jnp.float32)
    b2 = params["b2"].astype(jnp.float32)
    b3 = params["b3"].astype(jnp.float32)

    grid = (B_pad // bt,)
    resident = lambda shape: pl.BlockSpec(shape, lambda i: (0, 0))  # DMA'd once, stays in VMEM

    out = pl.pallas_call(
        _actor_kernel,
        out_shape=jax.ShapeDtypeStruct((B_pad, act_size), jnp.float32),
        grid=grid,
        in_specs=[
            pl.BlockSpec((bt, obs_size), lambda i: (i, 0)),  # x tile (pipelined, f32)
            resident((obs_size, hid)),   # w1
            resident((1, hid)),          # b1
            resident((hid, hid)),        # w2
            resident((1, hid)),          # b2
            resident((hid, act_size)),   # w3
            resident((1, act_size)),     # b3
        ],
        out_specs=pl.BlockSpec((bt, act_size), lambda i: (i, 0)),
        compiler_params=pltpu.CompilerParams(
            dimension_semantics=("parallel",),
        ),
    )(x_p, w1, b1, w2, b2, w3, b3)

    out = out if B_pad == B else out[:B]
    return out.astype(x.dtype)


def init_actor_params(key, obs_size, act_size, hidden=64):
    """Deterministic init matching PyTorch nn.Linear default (U[-1/sqrt(in), 1/sqrt(in)]).
    Weights stored as [in, out] (transposed vs. PyTorch)."""
    def linear(k, fan_in, fan_out):
        kw, kb = jax.random.split(k)
        bound = 1.0 / jnp.sqrt(jnp.float32(fan_in))
        w = jax.random.uniform(kw, (fan_in, fan_out), jnp.float32, -bound, bound)
        b = jax.random.uniform(kb, (1, fan_out), jnp.float32, -bound, bound)
        return w, b

    k1, k2, k3 = jax.random.split(key, 3)
    w1, b1 = linear(k1, obs_size, hidden)
    w2, b2 = linear(k2, hidden, hidden)
    w3, b3 = linear(k3, hidden, act_size)
    return {"w1": w1, "b1": b1, "w2": w2, "b2": b2, "w3": w3, "b3": b3}


def actor_reference(x, params):
    """Pure-JAX f32 reference of the same forward pass."""
    h1 = jnp.maximum(x @ params["w1"] + params["b1"], 0.0)
    h2 = jnp.maximum(h1 @ params["w2"] + params["b2"], 0.0)
    return h2 @ params["w3"] + params["b3"]


if __name__ == "__main__":
    obs_size, act_size, hidden = 16, 8, 64

    key = jax.random.PRNGKey(0)
    k_params, k_x1, k_x2 = jax.random.split(key, 3)
    params = init_actor_params(k_params, obs_size, act_size, hidden)

    # Small batch: single grid step (batch padded 8 -> 16 inside the wrapper).
    x_small = jax.random.normal(k_x1, (8, obs_size), dtype=jnp.float32)
    out_small = jax.block_until_ready(actor_forward(x_small, params))
    ref_small = actor_reference(x_small, params)
    assert out_small.shape == (8, act_size)
    assert jnp.allclose(out_small, ref_small, atol=1e-2, rtol=1e-2), "mismatch (small batch)"

    # Non-multiple batch: single 48-row tile with 8 padded rows sliced back off.
    x_odd = jax.random.normal(k_x2, (40, obs_size), dtype=jnp.float32)
    out_odd = jax.block_until_ready(actor_forward(x_odd, params))
    ref_odd = actor_reference(x_odd, params)
    assert out_odd.shape == (40, act_size)
    assert jnp.allclose(out_odd, ref_odd, atol=1e-2, rtol=1e-2), "mismatch (padded batch)"

    # Large batch: exercises a multi-step (even) grid with full tiles.
    x_big = jax.random.normal(k_x2, (4096, obs_size), dtype=jnp.float32)
    out_big = jax.block_until_ready(actor_forward(x_big, params))
    ref_big = actor_reference(x_big, params)
    assert out_big.shape == (4096, act_size)
    assert jnp.allclose(out_big, ref_big, atol=1e-2, rtol=1e-2), "mismatch (large batch)"

    print("KERNEL_OK")
</pallas_src>

<mosaic_0001>
module attributes {stable_mosaic.version = 11 : i64} {
  func.func @_actor_kernel(%arg0: i32, %arg1: memref<16x16xf32, #tpu.memory_space<vmem>>, %arg2: memref<16x64xbf16, #tpu.memory_space<vmem>>, %arg3: memref<1x64xf32, #tpu.memory_space<vmem>>, %arg4: memref<64x64xbf16, #tpu.memory_space<vmem>>, %arg5: memref<1x64xf32, #tpu.memory_space<vmem>>, %arg6: memref<64x8xbf16, #tpu.memory_space<vmem>>, %arg7: memref<1x8xf32, #tpu.memory_space<vmem>>, %arg8: memref<16x8xf32, #tpu.memory_space<vmem>>) attributes {dimension_semantics = [#tpu.dimension_semantics<parallel>], iteration_bounds = array<i64: 1>, scalar_prefetch = 0 : i64, scratch_operands = 0 : i64, tpu.core_type = #tpu.core_type<tc>, window_params = [{transform_indices = @transform_0, window_bounds = array<i64: 16, 16>}, {pipeline_mode = #tpu.pipeline_mode<synchronous>, transform_indices = @transform_1, window_bounds = array<i64: 16, 64>}, {pipeline_mode = #tpu.pipeline_mode<synchronous>, transform_indices = @transform_2, window_bounds = array<i64: 1, 64>}, {pipeline_mode = #tpu.pipeline_mode<synchronous>, transform_indices = @transform_3, window_bounds = array<i64: 64, 64>}, {pipeline_mode = #tpu.pipeline_mode<synchronous>, transform_indices = @transform_4, window_bounds = array<i64: 1, 64>}, {pipeline_mode = #tpu.pipeline_mode<synchronous>, transform_indices = @transform_5, window_bounds = array<i64: 64, 8>}, {pipeline_mode = #tpu.pipeline_mode<synchronous>, transform_indices = @transform_6, window_bounds = array<i64: 1, 8>}, {transform_indices = @transform_7, window_bounds = array<i64: 16, 8>}]} {
    %c0 = arith.constant 0 : index
    %c0_0 = arith.constant 0 : index
    %0 = vector.load %arg1[%c0, %c0_0] : memref<16x16xf32, #tpu.memory_space<vmem>>, vector<16x16xf32>
    %1 = arith.truncf %0 : vector<16x16xf32> to vector<16x16xbf16>
    %c0_1 = arith.constant 0 : index
    %c0_2 = arith.constant 0 : index
    %2 = vector.load %arg2[%c0_1, %c0_2] : memref<16x64xbf16, #tpu.memory_space<vmem>>, vector<16x64xbf16>
    %cst = arith.constant dense<0.000000e+00> : vector<16x64xf32>
    %3 = tpu.matmul %1, %2, %cst {dimension_numbers = #tpu.dot_dimension_numbers<[1], [0], [0], [1], [0, 0, 1, 1], [], []>} : vector<16x16xbf16>, vector<16x64xbf16>, vector<16x64xf32> -> vector<16x64xf32>
    %c0_3 = arith.constant 0 : index
    %c0_4 = arith.constant 0 : index
    %4 = vector.load %arg3[%c0_3, %c0_4] : memref<1x64xf32, #tpu.memory_space<vmem>>, vector<1x64xf32>
    %5 = vector.broadcast %4 : vector<1x64xf32> to vector<16x64xf32>
    %6 = arith.addf %3, %5 : vector<16x64xf32>
    %cst_5 = arith.constant 0.000000e+00 : f32
    %7 = vector.broadcast %cst_5 : f32 to vector<16x64xf32>
    %8 = arith.maximumf %6, %7 : vector<16x64xf32>
    %9 = arith.truncf %8 : vector<16x64xf32> to vector<16x64xbf16>
    %c0_6 = arith.constant 0 : index
    %c0_7 = arith.constant 0 : index
    %10 = vector.load %arg4[%c0_6, %c0_7] : memref<64x64xbf16, #tpu.memory_space<vmem>>, vector<64x64xbf16>
    %cst_8 = arith.constant dense<0.000000e+00> : vector<16x64xf32>
    %11 = tpu.matmul %9, %10, %cst_8 {dimension_numbers = #tpu.dot_dimension_numbers<[1], [0], [0], [1], [0, 0, 1, 1], [], []>} : vector<16x64xbf16>, vector<64x64xbf16>, vector<16x64xf32> -> vector<16x64xf32>
    %c0_9 = arith.constant 0 : index
    %c0_10 = arith.constant 0 : index
    %12 = vector.load %arg5[%c0_9, %c0_10] : memref<1x64xf32, #tpu.memory_space<vmem>>, vector<1x64xf32>
    %13 = vector.broadcast %12 : vector<1x64xf32> to vector<16x64xf32>
    %14 = arith.addf %11, %13 : vector<16x64xf32>
    %cst_11 = arith.constant 0.000000e+00 : f32
    %15 = vector.broadcast %cst_11 : f32 to vector<16x64xf32>
    %16 = arith.maximumf %14, %15 : vector<16x64xf32>
    %17 = arith.truncf %16 : vector<16x64xf32> to vector<16x64xbf16>
    %c0_12 = arith.constant 0 : index
    %c0_13 = arith.constant 0 : index
    %18 = vector.load %arg6[%c0_12, %c0_13] : memref<64x8xbf16, #tpu.memory_space<vmem>>, vector<64x8xbf16>
    %cst_14 = arith.constant dense<0.000000e+00> : vector<16x8xf32>
    %19 = tpu.matmul %17, %18, %cst_14 {dimension_numbers = #tpu.dot_dimension_numbers<[1], [0], [0], [1], [0, 0, 1, 1], [], []>} : vector<16x64xbf16>, vector<64x8xbf16>, vector<16x8xf32> -> vector<16x8xf32>
    %c0_15 = arith.constant 0 : index
    %c0_16 = arith.constant 0 : index
    %20 = vector.load %arg7[%c0_15, %c0_16] : memref<1x8xf32, #tpu.memory_space<vmem>>, vector<1x8xf32>
    %21 = vector.broadcast %20 : vector<1x8xf32> to vector<16x8xf32>
    %22 = arith.addf %19, %21 : vector<16x8xf32>
    %c0_17 = arith.constant 0 : index
    %c0_18 = arith.constant 0 : index
    %23 = vector.load %arg8[%c0_17, %c0_18] : memref<16x8xf32, #tpu.memory_space<vmem>>, vector<16x8xf32>
    tpu.vector_store %arg8[%c0_17, %c0_18], %22 {strides = array<i32>} : memref<16x8xf32, #tpu.memory_space<vmem>>, vector<16x8xf32>,
    return
  }
  func.func @transform_0(%arg0: i32) -> (i32, i32) {
    %c0_i32 = arith.constant 0 : i32
    %c0_i32_0 = arith.constant 0 : i32
    return %arg0, %c0_i32 : i32, i32
  }
  func.func @transform_1(%arg0: i32) -> (i32, i32) {
    %c0_i32 = arith.constant 0 : i32
    %c0_i32_0 = arith.constant 0 : i32
    %c0_i32_1 = arith.constant 0 : i32
    return %c0_i32, %c0_i32_0 : i32, i32
  }
  func.func @transform_2(%arg0: i32) -> (i32, i32) {
    %c0_i32 = arith.constant 0 : i32
    %c0_i32_0 = arith.constant 0 : i32
    %c0_i32_1 = arith.constant 0 : i32
    return %c0_i32, %c0_i32_0 : i32, i32
  }
  func.func @transform_3(%arg0: i32) -> (i32, i32) {
    %c0_i32 = arith.constant 0 : i32
    %c0_i32_0 = arith.constant 0 : i32
    %c0_i32_1 = arith.constant 0 : i32
    return %c0_i32, %c0_i32_0 : i32, i32
  }
  func.func @transform_4(%arg0: i32) -> (i32, i32) {
    %c0_i32 = arith.constant 0 : i32
    %c0_i32_0 = arith.constant 0 : i32
    %c0_i32_1 = arith.constant 0 : i32
    return %c0_i32, %c0_i32_0 : i32, i32
  }
  func.func @transform_5(%arg0: i32) -> (i32, i32) {
    %c0_i32 = arith.constant 0 : i32
    %c0_i32_0 = arith.constant 0 : i32
    %c0_i32_1 = arith.constant 0 : i32
    return %c0_i32, %c0_i32_0 : i32, i32
  }
  func.func @transform_6(%arg0: i32) -> (i32, i32) {
    %c0_i32 = arith.constant 0 : i32
    %c0_i32_0 = arith.constant 0 : i32
    %c0_i32_1 = arith.constant 0 : i32
    return %c0_i32, %c0_i32_0 : i32, i32
  }
  func.func @transform_7(%arg0: i32) -> (i32, i32) {
    %c0_i32 = arith.constant 0 : i32
    %c0_i32_0 = arith.constant 0 : i32
    return %arg0, %c0_i32 : i32, i32
  }
}

</mosaic_0001>

<bundles_post_ra>
// kernel: actor_forward.1
= control target key start
LH: loop header
LB: loop body
LE: loop exit
PB: predicated region body
PF: predicated region fallthrough
CT: control target
= control target key end

     0   :  { %v338_v0 = vmov 0.0   ;;  %vm339_vm0 = vmmov 0   ;;  %vm45_vm1 = vcmask 130048   ;;  %vm132_vm2 = vcmask 523264   ;;  %s430_s1 = inlined_call_operand.vmem [shape: bf16[16,64], index: 1, kind: input, shape index: {}]   ;;  %s431_s0 = inlined_call_operand.vmem [shape: f32[16,16], index: 0, kind: input, shape index: {}]   ;;  %s432_s3 = inlined_call_operand.vmem [shape: bf16[64,64], index: 3, kind: input, shape index: {}]   ;;  %s433_s5 = inlined_call_operand.vmem [shape: bf16[64,8], index: 5, kind: input, shape index: {}]   ;;  %s434_s2 = inlined_call_operand.vmem [shape: f32[1,64], index: 2, kind: input, shape index: {}]   ;;  %s435_s4 = inlined_call_operand.vmem [shape: f32[1,64], index: 4, kind: input, shape index: {}]   ;;  %s436_s6 = inlined_call_operand.vmem [shape: f32[1,8], index: 6, kind: input, shape index: {}]   ;;  %s437_s7 = inlined_call_operand.vmem [shape: f32[16,8], index: 7, kind: output, shape index: {}]  }
   0x1   :  { %297 = vmatprep.subr.bf16.mxu0 %v338_v0  ;;  %v329_v1 = vld [vmem:[%s430_s1] sm:$0xff]   ;;  %299 = vmatprep.mubr.msk.bf16.mxu0 %vm339_vm0, %v338_v0  ;;  %v28_v3 = vld [vmem:[%s431_s0 + $0x8] sm:$0xff]  ;;  %v332_v7 = vld [vmem:[%s432_s3 + $0x10] sm:$0xff]   ;;  %vm263_vm3 = vcmask 64512  }
   0x2   :  { %v27_v2 = vld [vmem:[%s431_s0] sm:$0xff]  ;;  %303 = vmatprep.subr.bf16.mxu1 %v338_v0  ;;  %311 = vmatprep.mubr.msk.bf16.mxu1 %vm339_vm0, %v338_v0  ;;  %v331_v6 = vld [vmem:[%s432_s3 + $0x8] sm:$0xff]   ;;  %v333_v8 = vld [vmem:[%s432_s3 + $0x18] sm:$0xff]  }
   0x3   :  { %298 = vmatpush3.bf16.msra.mxu0 %v329_v1  ;;  %v29_v4 = vpack.c.bf16 %v28_v3, %v27_v2  ;;  %v330_v5 = vld [vmem:[%s432_s3] sm:$0xff]   ;;  %v335_v10 = vld [vmem:[%s433_s5 + $0x8] sm:$0xff]   ;;  %v336_v21 = vld [vmem:[%s433_s5 + $0x10] sm:$0xff]  }
   0x4   :  { %315 = vmatprep.subr.bf16.mxu0 %v338_v0  ;;  %304 = vmatpush3.bf16.msra.mxu1 %v330_v5  ;;  %v334_v9 = vld [vmem:[%s433_s5] sm:$0xff]   ;;  %v337_v22 = vld [vmem:[%s433_s5 + $0x18] sm:$0xff]  }
   0x5   :  { %305 = vmatprep.subr.bf16.mxu1 %v338_v0  ;;  %v270_v11 = vld [vmem:[%s434_s2] ss:$0 sm:$0xff] }
   0x6   :  { %300 = vmatmul.mubr.msk.bf16.vlgmr.msra.gmra.mrb[0].mxu0 %vm45_vm1, %v29_v4  ;;  %v273_v23 = vld [vmem:[%s435_s4] ss:$0 sm:$0xff] }
   0x7   :  { %323 = vmatprep.mubr.msk.bf16.mxu0 %vm339_vm0, %v338_v0  ;;  %316 = vmatpush3.bf16.msra.mxu0 %v334_v9  ;;  %v279_v33 = vld [vmem:[%s436_s6] ss:$0 sm:$0xff] }
   0x8   :  { %306 = vmatpush3.bf16.msra.mxu1 %v331_v6  ;;  %317 = vmatprep.subr.bf16.mxu0 %v338_v0 }
   0x9   :  { %307 = vmatprep.subr.bf16.mxu1 %v338_v0 }
   0xb   :  { %318 = vmatpush3.bf16.msra.mxu0 %v335_v10 }
   0xc   :  { %308 = vmatpush3.bf16.msra.mxu1 %v332_v7  ;;  %319 = vmatprep.subr.bf16.mxu0 %v338_v0 }
   0xd   :  { %309 = vmatprep.subr.bf16.mxu1 %v338_v0 }
   0xf   :  { %320 = vmatpush3.bf16.msra.mxu0 %v336_v21 }
  0x10   :  { %310 = vmatpush3.bf16.msra.mxu1 %v333_v8  ;;  %321 = vmatprep.subr.bf16.mxu0 %v338_v0 }
  0x13   :  { %322 = vmatpush3.bf16.msra.mxu0 %v337_v22 }
  0xd9   :  { %v83_v12 = vpop.f32.mrb[0].mxu0 }
  0xda   :  { %v84_v13 = vadd.f32 %v270_v11, %v83_v12  ;;  %v301_v14 = vpop.f32.mrb[1].mxu0 }
  0xdb   :  { %v86_v15 = vpop.f32.mrb[2].mxu0 }
  0xdc   :  { %v87_v16 = vadd.f32 %v270_v11, %v86_v15  ;;  %v302_v17 = vpop.f32.mrb[3].mxu0  ;;  %v90_v18 = vmax.f32 %v84_v13, 0.0 }
  0xde   :  { %v91_v19 = vmax.f32 %v87_v16, 0.0 }
  0xe0   :  { %v92_v20 = vpack.c.bf16 %v91_v19, %v90_v18 }
  0xe2   :  { %312 = vmatmul.mubr.msk.bf16.vlgmr.msra.gmra.mrb[0].mxu1 %vm132_vm2, %v92_v20 }
 0x1b5   :  { %v170_v24 = vpop.f32.mrb[0].mxu1 }
 0x1b6   :  { %v171_v25 = vadd.f32 %v273_v23, %v170_v24  ;;  %v313_v26 = vpop.f32.mrb[1].mxu1 }
 0x1b7   :  { %v173_v27 = vpop.f32.mrb[2].mxu1 }
 0x1b8   :  { %v174_v28 = vadd.f32 %v273_v23, %v173_v27  ;;  %v314_v29 = vpop.f32.mrb[3].mxu1  ;;  %v177_v30 = vmax.f32 %v171_v25, 0.0 }
 0x1ba   :  { %v178_v31 = vmax.f32 %v174_v28, 0.0 }
 0x1bc   :  { %v179_v32 = vpack.c.bf16 %v178_v31, %v177_v30 }
 0x1be   :  { %324 = vmatmul.mubr.msk.bf16.vlgmr.msra.gmra.mrb[4].mxu0 %vm132_vm2, %v179_v32 }
 0x291   :  { %v256_v34 = vpop.f32.mrb[4].mxu0 }
 0x292   :  { %v257_v35 = vadd.f32 %v279_v33, %v256_v34  ;;  %v325_v36 = vpop.f32.mrb[5].mxu0 }
 0x293   :  { %v259_v37 = vpop.f32.mrb[6].mxu0 }
 0x294   :  { %264 = vst.msk [vmem:[%s437_s7] sm:$0xff] %vm263_vm3, %v257_v35  ;;  %v260_v38 = vadd.f32 %v279_v33, %v259_v37  ;;  %v326_v39 = vpop.f32.mrb[7].mxu0 }
 0x296   :  { %265 = vst.msk [vmem:[%s437_s7 + $0x8] sm:$0xff] %vm263_vm3, %v260_v38 }

</bundles_post_ra>
